<compile_context>
chip_gen: v7x
topology: tpu7x:2x2x1
jax: 0.10.0
libtpu: 0.0.40
codegen_flags: <defaults>
</compile_context>

<pallas_src>
import functools

import numpy as np

import jax
import jax.numpy as jnp
from jax.experimental import pallas as pl
from jax.experimental.pallas import tpu as pltpu


# ----------------------------------------------------------------------------- #
# Kernel
# ----------------------------------------------------------------------------- #
def _cnn_text_kernel(x_ref, w_ref, b_ref, o_ref, *, widths, co_pad, compute_dtype):
    # x_ref: (bt, L, H) f32          one batch tile (DMA'd in f32, cast in-kernel)
    # w_ref: (w_max*H, C_tot)        packed weights, C_tot = n_widths * co_pad
    # b_ref: (1, C_tot) f32          bias (zero in padded channels)
    # o_ref: (bt, C_tot) f32         pooled features (lane-dense, multiple of 128)
    bt, seq_len, h = x_ref.shape
    c_tot = o_ref.shape[1]
    w_max = max(widths)
    m = bt * seq_len

    # Fold batch into the MXU M dimension.
    x2 = x_ref[...].reshape(m, h)

    # im2col along lanes via sublane rolls of the narrow (m, H) operand: column
    # block i of row t holds x[t+i].  Rows that wrap past a sequence end only
    # matter for t >= l_out of their width group and are masked after ReLU.
    cols = [x2]
    for i in range(1, w_max):                       # static, tiny trip count
        cols.append(pltpu.roll(x2, shift=(m - i) % m, axis=0))
    x_cat = jnp.concatenate(cols, axis=1)           # (m, w_max*H), f32
    x_cat = x_cat.astype(compute_dtype)             # in-kernel cast (VPU, free)

    # One wide-K MXU matmul for every width and channel group, f32 accumulation.
    acc = jnp.dot(x_cat, w_ref[...], preferred_element_type=jnp.float32)

    # Bias + ReLU in f32 (single broadcast, hoisted out of any loop).
    acc = jnp.maximum(acc + b_ref[...], 0.0)

    # Per-width masked max over valid time positions.  Post-ReLU values are >= 0
    # and every group has at least one valid position, so zeroing invalid rows
    # preserves the max.  No modulo: a tiny (1, L, co_pad) time iota is compared
    # against each group's static l_out.
    acc3 = acc.reshape(bt, seq_len, c_tot)
    t_iota = jax.lax.broadcasted_iota(jnp.int32, (1, seq_len, co_pad), 1)
    for g, w in enumerate(widths):                  # static loop over width groups
        l_out = seq_len - w + 1
        grp = acc3[:, :, g * co_pad:(g + 1) * co_pad]       # lane-aligned slice
        grp = jnp.where(t_iota < l_out, grp, 0.0)
        o_ref[:, g * co_pad:(g + 1) * co_pad] = grp.max(axis=1).astype(o_ref.dtype)


# ----------------------------------------------------------------------------- #
# VMEM budgeting & batch-tile selection
# ----------------------------------------------------------------------------- #
_VMEM_TILE_FRACTION = 0.55     # budget for the per-step working set
_VMEM_LIMIT_FRACTION = 0.75    # scoped-VMEM limit handed to Mosaic


def _tpu_vmem_capacity_bytes():
    try:
        return int(pltpu.get_tpu_info().vmem_capacity_bytes)
    except Exception:
        return 64 * 1024 * 1024          # conservative: v7x per-TensorCore VMEM


def _est_vmem_bytes(bt, L, H, w_max, c_tot, compute_bytes):
    """Rough per-grid-step VMEM footprint: pipelined tiles + in-kernel temporaries."""
    m = bt * L
    pipeline = (2 * bt * L * H * 4                       # x tile (f32), double-buffered
                + 2 * bt * c_tot * 4                     # out tile (f32), double-buffered
                + 2 * (w_max * H * c_tot * compute_bytes + c_tot * 4))  # weight/bias
    temps = m * ((w_max + 1) * H * 4                     # x2 + rolled copies (f32)
                 + w_max * H * (4 + compute_bytes)       # im2col slab f32 + cast copy
                 + 2 * c_tot * 4)                        # f32 activation + pooling temps
    return pipeline + temps


def _pick_batch_tile(B, L, H, w_max, c_tot, compute_bytes, vmem_budget):
    """Pick the batch tile so M = bt*L lands in ~[256, 2048], bounded by VMEM.

    Legal tiles are divisors of B that either cover the whole batch or are a
    multiple of 8, so the (bt, C_tot) output block stays sublane aligned.
    """
    legal = [d for d in range(1, B + 1) if B % d == 0 and (d == B or d % 8 == 0)]
    fits = [d for d in legal
            if _est_vmem_bytes(d, L, H, w_max, c_tot, compute_bytes) <= vmem_budget]
    if not fits:
        # TODO(synk): very long sequences where even the smallest tile blows the
        # VMEM budget would need an extra time-tiling grid axis.
        fits = [min(legal)]
    preferred = [d for d in fits if d * L <= 2048] or [min(fits)]
    bt = max(preferred)
    # v7x has 2 TensorCores: take a 2-step "parallel" grid instead of 1 step, but
    # only if each core still gets M >= 256 rows of MXU work.
    if B // bt == 1:
        split = [d for d in fits if B // d >= 2 and d * L >= 256]
        if split:
            bt = max(split)
    return bt


# ----------------------------------------------------------------------------- #
# Parameter packing (one-off, host-side — hoisted out of the forward path)
# ----------------------------------------------------------------------------- #
def pack_cnn_text_params(params, compute_dtype=jnp.float32):
    """Pack per-width (w, H, Co) weights + (Co,) biases once, at load time.

    Produces a single (w_max*H, n_widths*co_pad) lane-dense weight slab (rows i*H+h
    hold W_g[i, h, :], zero for i >= w_g; channels zero-padded to co_pad = 128k) and
    a (1, n_widths*co_pad) f32 bias row.  Row order matches the kernel's im2col.
    """
    widths = tuple(int(w.shape[0]) for (w, _) in params)
    H = int(params[0][0].shape[1])
    Co = int(params[0][0].shape[2])
    n_w = len(widths)
    w_max = max(widths)
    co_pad = ((Co + 127) // 128) * 128
    c_tot = n_w * co_pad

    w_np = np.zeros((w_max * H, c_tot), dtype=np.float32)
    b_np = np.zeros((1, c_tot), dtype=np.float32)
    for g, (w_arr, b_arr) in enumerate(params):
        w = int(w_arr.shape[0])
        w_np[: w * H, g * co_pad: g * co_pad + Co] = (
            np.asarray(w_arr, dtype=np.float32).reshape(w * H, Co))
        b_np[0, g * co_pad: g * co_pad + Co] = np.asarray(b_arr, dtype=np.float32)

    return dict(
        w_slab=jnp.asarray(w_np, dtype=compute_dtype),   # bf16 on v6e/v7x recommended
        bias=jnp.asarray(b_np, dtype=jnp.float32),
        widths=widths, H=H, Co=Co, w_max=w_max, co_pad=co_pad, c_tot=c_tot,
        compute_dtype=compute_dtype,
    )


# ----------------------------------------------------------------------------- #
# Forward
# ----------------------------------------------------------------------------- #
def cnn_text_forward(x, packed, *, batch_tile=None):
    """Pallas implementation of CNN_Text.forward.

    x: (B, L, H) f32; packed: result of pack_cnn_text_params.
    Returns (B, n_widths * Co), matching torch.cat([...], dim=1).
    """
    B, L, H = x.shape
    widths = packed["widths"]
    w_max = packed["w_max"]
    co_pad = packed["co_pad"]
    c_tot = packed["c_tot"]
    Co = packed["Co"]
    compute_dtype = packed["compute_dtype"]
    n_w = len(widths)
    if H != packed["H"]:
        raise ValueError(f"embed dim mismatch: x has {H}, params have {packed['H']}")
    if L < w_max:
        raise ValueError(f"seq_len={L} must be >= max filter width {w_max}")

    cap = _tpu_vmem_capacity_bytes()
    cbytes = jnp.dtype(compute_dtype).itemsize
    bt = batch_tile if batch_tile is not None else _pick_batch_tile(
        B, L, H, w_max, c_tot, cbytes, int(cap * _VMEM_TILE_FRACTION))
    assert B % bt == 0, (B, bt)
    grid = (B // bt,)

    kernel = functools.partial(_cnn_text_kernel, widths=widths, co_pad=co_pad,
                               compute_dtype=compute_dtype)

    out = pl.pallas_call(
        kernel,
        out_shape=jax.ShapeDtypeStruct((B, c_tot), jnp.float32),
        grid_spec=pltpu.PrefetchScalarGridSpec(
            num_scalar_prefetch=0,
            grid=grid,
            in_specs=[
                pl.BlockSpec((bt, L, H), lambda b: (b, 0, 0)),
                # Grid-invariant weight/bias slabs (fetched once).
                pl.BlockSpec((w_max * H, c_tot), lambda b: (0, 0)),
                pl.BlockSpec((1, c_tot), lambda b: (0, 0)),
            ],
            out_specs=pl.BlockSpec((bt, c_tot), lambda b: (b, 0)),
        ),
        compiler_params=pltpu.CompilerParams(
            dimension_semantics=("parallel",),
            vmem_limit_bytes=int(cap * _VMEM_LIMIT_FRACTION),
        ),
    )(x, packed["w_slab"], packed["bias"])     # x DMA'd as-is: no wrapper pre-cast

    # Strip channel padding; order matches torch.cat([w=3, w=4, w=5], dim=1).
    return out.reshape(B, n_w, co_pad)[:, :, :Co].reshape(B, n_w * Co)


# ----------------------------------------------------------------------------- #
# Pure-JAX reference (f32) for correctness checking
# ----------------------------------------------------------------------------- #
def cnn_text_reference(x, params):
    B, L, _ = x.shape
    outs = []
    for (w_arr, b_arr) in params:
        w, _, _ = w_arr.shape
        l_out = L - w + 1
        acc = 0.0
        for i in range(w):
            acc = acc + jnp.einsum(
                "blh,hc->blc", x[:, i:i + l_out, :], w_arr[i],
                preferred_element_type=jnp.float32)
        acc = jax.nn.relu(acc + b_arr[None, None, :])
        outs.append(jnp.max(acc, axis=1))
    return jnp.concatenate(outs, axis=1)


if __name__ == "__main__":
    # Small shapes consistent with the module: n_in (embed dim) = 32,
    # seq len = 16, batch = 2; default widths [3, 4, 5], filters = 100.
    B, L, H = 2, 16, 32
    widths = [3, 4, 5]
    filters = 100

    key = jax.random.PRNGKey(0)
    kx, *kps = jax.random.split(key, 1 + 2 * len(widths))

    x = jax.random.normal(kx, (B, L, H), dtype=jnp.float32)

    # Deterministic parameter init (torch Conv2d weight shape is (Co, 1, w, H);
    # stored here as (w, H, Co) for lane-dense matmuls).
    params = []
    for i, w in enumerate(widths):
        kw, kb = kps[2 * i], kps[2 * i + 1]
        scale = 1.0 / jnp.sqrt(jnp.float32(w * H))
        weight = jax.random.normal(kw, (w, H, filters), dtype=jnp.float32) * scale
        bias = jax.random.normal(kb, (filters,), dtype=jnp.float32) * 0.1
        params.append((weight, bias))

    ref = cnn_text_reference(x, params)

    # f32 compute path: same math as the PyTorch module (summation order differs —
    # one wide-K MXU dot vs per-width einsums — hence the modest tolerance).
    packed_f32 = pack_cnn_text_params(params, compute_dtype=jnp.float32)
    out_f32 = jax.block_until_ready(cnn_text_forward(x, packed_f32))
    assert out_f32.shape == (B, len(widths) * filters), out_f32.shape
    assert jnp.allclose(out_f32, ref, atol=1e-3, rtol=1e-3), "f32 mismatch vs reference"

    # bf16 matmul operands (v6e/v7x MXU-native), f32 accumulation: loose tolerance.
    packed_bf16 = pack_cnn_text_params(params, compute_dtype=jnp.bfloat16)
    out_bf16 = jax.block_until_ready(cnn_text_forward(x, packed_bf16))
    assert jnp.allclose(out_bf16, ref, atol=5e-2, rtol=5e-2), "bf16 mismatch vs reference"

    print("KERNEL_OK")
</pallas_src>

<mosaic_0001>
module attributes {stable_mosaic.version = 11 : i64} {
  func.func @_cnn_text_kernel(%arg0: i32, %arg1: memref<2x16x32xf32, #tpu.memory_space<vmem>>, %arg2: memref<160x384xf32, #tpu.memory_space<vmem>>, %arg3: memref<1x384xf32, #tpu.memory_space<vmem>>, %arg4: memref<2x384xf32, #tpu.memory_space<vmem>>) attributes {dimension_semantics = [#tpu.dimension_semantics<parallel>], iteration_bounds = array<i64: 1>, scalar_prefetch = 0 : i64, scratch_operands = 0 : i64, tpu.core_type = #tpu.core_type<tc>, window_params = [{transform_indices = @transform_0, window_bounds = array<i64: 2, 16, 32>}, {pipeline_mode = #tpu.pipeline_mode<synchronous>, transform_indices = @transform_1, window_bounds = array<i64: 160, 384>}, {pipeline_mode = #tpu.pipeline_mode<synchronous>, transform_indices = @transform_2, window_bounds = array<i64: 1, 384>}, {transform_indices = @transform_3, window_bounds = array<i64: 2, 384>}]} {
    %c0 = arith.constant 0 : index
    %c0_0 = arith.constant 0 : index
    %c0_1 = arith.constant 0 : index
    %0 = vector.load %arg1[%c0, %c0_0, %c0_1] : memref<2x16x32xf32, #tpu.memory_space<vmem>>, vector<2x16x32xf32>
    %1 = vector.shape_cast %0 : vector<2x16x32xf32> to vector<32x32xf32>
    %c31_i32 = arith.constant 31 : i32
    %2 = tpu.dynamic_rotate %1 by %c31_i32 dim 0 : vector<32x32xf32>, i32 -> vector<32x32xf32>
    %c30_i32 = arith.constant 30 : i32
    %3 = tpu.dynamic_rotate %1 by %c30_i32 dim 0 : vector<32x32xf32>, i32 -> vector<32x32xf32>
    %c29_i32 = arith.constant 29 : i32
    %4 = tpu.dynamic_rotate %1 by %c29_i32 dim 0 : vector<32x32xf32>, i32 -> vector<32x32xf32>
    %c28_i32 = arith.constant 28 : i32
    %5 = tpu.dynamic_rotate %1 by %c28_i32 dim 0 : vector<32x32xf32>, i32 -> vector<32x32xf32>
    %6 = tpu.concatenate %1, %2, %3, %4, %5 in 1 : vector<32x32xf32>, vector<32x32xf32>, vector<32x32xf32>, vector<32x32xf32>, vector<32x32xf32> -> vector<32x160xf32>
    %c0_2 = arith.constant 0 : index
    %c0_3 = arith.constant 0 : index
    %7 = vector.load %arg2[%c0_2, %c0_3] : memref<160x384xf32, #tpu.memory_space<vmem>>, vector<160x384xf32>
    %cst = arith.constant dense<0.000000e+00> : vector<32x384xf32>
    %8 = tpu.matmul %6, %7, %cst {dimension_numbers = #tpu.dot_dimension_numbers<[1], [0], [0], [1], [0, 0, 1, 1], [], []>} : vector<32x160xf32>, vector<160x384xf32>, vector<32x384xf32> -> vector<32x384xf32>
    %c0_4 = arith.constant 0 : index
    %c0_5 = arith.constant 0 : index
    %9 = vector.load %arg3[%c0_4, %c0_5] : memref<1x384xf32, #tpu.memory_space<vmem>>, vector<1x384xf32>
    %10 = vector.broadcast %9 : vector<1x384xf32> to vector<32x384xf32>
    %11 = arith.addf %8, %10 : vector<32x384xf32>
    %cst_6 = arith.constant 0.000000e+00 : f32
    %12 = vector.broadcast %cst_6 : f32 to vector<32x384xf32>
    %13 = arith.maximumf %11, %12 : vector<32x384xf32>
    %14 = vector.shape_cast %13 : vector<32x384xf32> to vector<2x16x384xf32>
    %15 = tpu.iota {dimensions = array<i32: 1>} : vector<1x16x128xi32>
    %16 = vector.extract_strided_slice %14 {offsets = [0, 0, 0], sizes = [2, 16, 128], strides = [1, 1, 1]} : vector<2x16x384xf32> to vector<2x16x128xf32>
    %c14_i32 = arith.constant 14 : i32
    %17 = vector.broadcast %c14_i32 : i32 to vector<1x16x128xi32>
    %18 = arith.cmpi slt, %15, %17 : vector<1x16x128xi32>
    %cst_7 = arith.constant 0.000000e+00 : f32
    %19 = vector.shape_cast %18 : vector<1x16x128xi1> to vector<1x16x128xi1>
    %20 = vector.broadcast %19 : vector<1x16x128xi1> to vector<2x16x128xi1>
    %21 = vector.broadcast %cst_7 : f32 to vector<2x16x128xf32>
    %22 = arith.select %20, %16, %21 : vector<2x16x128xi1>, vector<2x16x128xf32>
    %cst_8 = arith.constant dense<0xFF800000> : vector<2x128xf32>
    %23 = vector.multi_reduction <maximumf>, %22, %cst_8 [1] : vector<2x16x128xf32> to vector<2x128xf32>
    %c0_9 = arith.constant 0 : index
    %c0_10 = arith.constant 0 : index
    %24 = vector.load %arg4[%c0_9, %c0_10] : memref<2x384xf32, #tpu.memory_space<vmem>>, vector<2x128xf32>
    tpu.vector_store %arg4[%c0_9, %c0_10], %23 {strides = array<i32>} : memref<2x384xf32, #tpu.memory_space<vmem>>, vector<2x128xf32>,
    %25 = vector.extract_strided_slice %14 {offsets = [0, 0, 128], sizes = [2, 16, 128], strides = [1, 1, 1]} : vector<2x16x384xf32> to vector<2x16x128xf32>
    %c13_i32 = arith.constant 13 : i32
    %26 = vector.broadcast %c13_i32 : i32 to vector<1x16x128xi32>
    %27 = arith.cmpi slt, %15, %26 : vector<1x16x128xi32>
    %cst_11 = arith.constant 0.000000e+00 : f32
    %28 = vector.shape_cast %27 : vector<1x16x128xi1> to vector<1x16x128xi1>
    %29 = vector.broadcast %28 : vector<1x16x128xi1> to vector<2x16x128xi1>
    %30 = vector.broadcast %cst_11 : f32 to vector<2x16x128xf32>
    %31 = arith.select %29, %25, %30 : vector<2x16x128xi1>, vector<2x16x128xf32>
    %cst_12 = arith.constant dense<0xFF800000> : vector<2x128xf32>
    %32 = vector.multi_reduction <maximumf>, %31, %cst_12 [1] : vector<2x16x128xf32> to vector<2x128xf32>
    %c0_13 = arith.constant 0 : index
    %c128 = arith.constant 128 : index
    %33 = vector.load %arg4[%c0_13, %c128] : memref<2x384xf32, #tpu.memory_space<vmem>>, vector<2x128xf32>
    tpu.vector_store %arg4[%c0_13, %c128], %32 {strides = array<i32>} : memref<2x384xf32, #tpu.memory_space<vmem>>, vector<2x128xf32>,
    %34 = vector.extract_strided_slice %14 {offsets = [0, 0, 256], sizes = [2, 16, 128], strides = [1, 1, 1]} : vector<2x16x384xf32> to vector<2x16x128xf32>
    %c12_i32 = arith.constant 12 : i32
    %35 = vector.broadcast %c12_i32 : i32 to vector<1x16x128xi32>
    %36 = arith.cmpi slt, %15, %35 : vector<1x16x128xi32>
    %cst_14 = arith.constant 0.000000e+00 : f32
    %37 = vector.shape_cast %36 : vector<1x16x128xi1> to vector<1x16x128xi1>
    %38 = vector.broadcast %37 : vector<1x16x128xi1> to vector<2x16x128xi1>
    %39 = vector.broadcast %cst_14 : f32 to vector<2x16x128xf32>
    %40 = arith.select %38, %34, %39 : vector<2x16x128xi1>, vector<2x16x128xf32>
    %cst_15 = arith.constant dense<0xFF800000> : vector<2x128xf32>
    %41 = vector.multi_reduction <maximumf>, %40, %cst_15 [1] : vector<2x16x128xf32> to vector<2x128xf32>
    %c0_16 = arith.constant 0 : index
    %c256 = arith.constant 256 : index
    %42 = vector.load %arg4[%c0_16, %c256] : memref<2x384xf32, #tpu.memory_space<vmem>>, vector<2x128xf32>
    tpu.vector_store %arg4[%c0_16, %c256], %41 {strides = array<i32>} : memref<2x384xf32, #tpu.memory_space<vmem>>, vector<2x128xf32>,
    return
  }
  func.func @transform_0(%arg0: i32) -> (i32, i32, i32) {
    %c0_i32 = arith.constant 0 : i32
    %c0_i32_0 = arith.constant 0 : i32
    %c0_i32_1 = arith.constant 0 : i32
    return %arg0, %c0_i32, %c0_i32_0 : i32, i32, i32
  }
  func.func @transform_1(%arg0: i32) -> (i32, i32) {
    %c0_i32 = arith.constant 0 : i32
    %c0_i32_0 = arith.constant 0 : i32
    %c0_i32_1 = arith.constant 0 : i32
    return %c0_i32, %c0_i32_0 : i32, i32
  }
  func.func @transform_2(%arg0: i32) -> (i32, i32) {
    %c0_i32 = arith.constant 0 : i32
    %c0_i32_0 = arith.constant 0 : i32
    %c0_i32_1 = arith.constant 0 : i32
    return %c0_i32, %c0_i32_0 : i32, i32
  }
  func.func @transform_3(%arg0: i32) -> (i32, i32) {
    %c0_i32 = arith.constant 0 : i32
    %c0_i32_0 = arith.constant 0 : i32
    return %arg0, %c0_i32 : i32, i32
  }
}

</mosaic_0001>

<bundles_post_ra>
// kernel: tpu_custom_call.1
= control target key start
LH: loop header
LB: loop body
LE: loop exit
PB: predicated region body
PF: predicated region fallthrough
CT: control target
= control target key end

     0   :  { %8 = vsyncpa [#allocation3], 0  ;;  %s1001_s0 = inlined_call_operand.hbm [shape: f32[2,16,32], index: 0, kind: input, shape index: {}]   ;;  %s1002_s1 = inlined_call_operand.hbm [shape: f32[160,384], index: 1, kind: input, shape index: {}]   ;;  %s1003_s2 = inlined_call_operand.vmem [shape: f32[1,384], index: 2, kind: input, shape index: {}]   ;;  %s1004_s3 = inlined_call_operand.hbm [shape: f32[2,384], index: 3, kind: output, shape index: {}]  }
   0x1   :  { %9 = vsyncpa [#allocation6], 0 }
   0x2   :  { %10 = vsyncpa [#allocation4], 0  ;;  %s770_s12 = smov [#allocation2]   ;;  %s698_s16 = scalar_lea.hbm %s1001_s0, 512 }
   0x3   :  { %s16_s13 = sshll.u32 %s770_s12, 4  ;;  %p699_p0 = scmp.ne.s32.totalorder %s1001_s0, %s698_s16  ;;  %s17_s13 = int_to_ptr.vmem [resolvable:$true] %s16_s13 }
   0x4   :  { %p702_p1 = scmp.lt.u32.totalorder %s698_s16, %s1001_s0 }
   0x6   :  { %p704_p2 = pnand %p702_p1, %p699_p0 }
   0x8   :  { %707 = shalt.err (!%p704_p2)
}
   0x9   :  { %s708_s21 = scalar_lea.vmem %s17_s13, 512  ;;  %p713_p4 = scmp.lt.s32.totalorder %s17_s13, %s17_s13 }
   0xa   :  { %p709_p3 = scmp.ne.s32.totalorder %s17_s13, %s708_s21  ;;  %p714_p5 = scmp.lt.s32.totalorder %s708_s21, %s708_s21 }
   0xc   :  { %p715_p6 = por %p714_p5, %p713_p4 }
   0xe   :  { %p716_p7 = pnand %p715_p6, %p709_p3 }
  0x10   :  { %719 = shalt.err (!%p716_p7)
}
  0x11   :  { %s771_s22 = smov 128   ;;  %s772_s23 = smov 8  }
  0x12   :  { %22 = dma.hbm_to_vmem [thread:$0]  %s1001_s0, 512, %s17_s13, [#allocation3], %s771_s22, %s771_s22, %s772_s23  }
  0x13   :  { %s773_s26 = smov [#allocation5]   ;;  %s720_s30 = scalar_lea.hbm %s1002_s1, 7680 }
  0x14   :  { %s28_s27 = sshll.u32 %s773_s26, 4  ;;  %p721_p8 = scmp.ne.s32.totalorder %s1002_s1, %s720_s30  ;;  %s29_s27 = int_to_ptr.vmem [resolvable:$true] %s28_s27 }
  0x15   :  { %p724_p9 = scmp.lt.u32.totalorder %s720_s30, %s1002_s1 }
  0x17   :  { %p726_p10 = pnand %p724_p9, %p721_p8 }
  0x19   :  { %729 = shalt.err (!%p726_p10)
}
  0x1a   :  { %s730_s8 = scalar_lea.vmem %s29_s27, 7680  ;;  %p735_p12 = scmp.lt.s32.totalorder %s29_s27, %s29_s27 }
  0x1b   :  { %p731_p11 = scmp.ne.s32.totalorder %s29_s27, %s730_s8  ;;  %p736_p13 = scmp.lt.s32.totalorder %s730_s8, %s730_s8 }
  0x1d   :  { %p737_p0 = por %p736_p13, %p735_p12 }
  0x1f   :  { %p738_p1 = pnand %p737_p0, %p731_p11 }
  0x21   :  { %741 = shalt.err (!%p738_p1)
}
  0x22   :  { %s774_s0 = smov 384   ;;  %s775_s9 = smov 24  }
  0x23   :  { %34 = dma.hbm_to_vmem [thread:$0]  %s1002_s1, 7680, %s29_s27, [#allocation6], %s774_s0, %s774_s0, %s775_s9  }
  0x24   :  { %764 = dma.done.wait [#allocation3], 512  }
  0x25   :  { %765 = vsyncadd [#allocation3], 4294966784 }
  0x26   :  { %766 = dma.done.wait [#allocation6], 7680  }
  0x27   :  { %767 = vsyncadd [#allocation6], 4294959616  ;;  %v51_v0 = vlaneseq  ;;  %v776_v1 = vmov 0.0|0.0   ;;  %v829_v3 = vld [vmem:[#allocation2] sm:$0xff]  ;;  %v831_v4 = vld [vmem:[#allocation2 + $0x8] sm:$0xff]  ;;  %s777_s1 = smov 32  }
  0x28   :  { %641 = vmatprep.subr.bf16.mxu1 %v776_v1  ;;  %v833_v5 = vld [vmem:[#allocation2 + $0x10] sm:$0xff]  ;;  %v47_v6 = vrot.slane %v829_v3, 1  ;;  %v48_v7 = vrot.slane %v831_v4, 1  ;;  %v67_v9 = vrot.slane %v829_v3, 3  ;;  %v842_v10 = vld [vmem:[#allocation2 + $0x18] sm:$0xff]  ;;  %v68_v11 = vrot.slane %v831_v4, 3 }
  0x29   :  { %v827_v2 = vshrl.u32 %v51_v0, 7  ;;  %v49_v8 = vrot.slane %v833_v5, 1  ;;  %v69_v12 = vrot.slane %v833_v5, 3  ;;  %v58_v13 = vrot.slane %v829_v3, 2  ;;  %v149_v19 = vld [vmem:[#allocation5 + $0x8] sm:$0xff]  ;;  %v152_v20 = vld [vmem:[#allocation5 + $0x20] sm:$0xff] }
  0x2a   :  { %v59_v14 = vrot.slane %v831_v4, 2  ;;  %v60_v17 = vrot.slane %v833_v5, 2  ;;  %v50_v18 = vrot.slane %v842_v10, 1  ;;  %v148_v21 = vld [vmem:[#allocation5] sm:$0xff]  ;;  %v151_v26 = vld [vmem:[#allocation5 + $0x18] sm:$0xff]  ;;  %v150_v27 = vld [vmem:[#allocation5 + $0x10] sm:$0xff]  ;;  %v601_v35 = vpack.c.bf16 %v152_v20, %v149_v19 }
  0x2b   :  { %vm53_vm0 = vcmp.lt.s32.totalorder %v827_v2, 7  ;;  %vm71_vm1 = vcmp.lt.s32.totalorder %v827_v2, 5  ;;  %vm62_vm2 = vcmp.lt.s32.totalorder %v827_v2, 6  ;;  %v153_v28 = vld [vmem:[#allocation5 + $0x28] sm:$0xff]  ;;  %v155_v31 = vld [vmem:[#allocation5 + $0x38] sm:$0xff]  ;;  %v158_v32 = vld [vmem:[#allocation5 + $0x50] sm:$0xff]  ;;  %v603_v40 = vpack.c.bf16 %v151_v26, %v148_v21 }
  0x2c   :  { %v55_v15 = vsel %vm53_vm0, %v48_v7, %v49_v8  ;;  %v56_v16 = vsel %vm53_vm0, %v47_v6, %v48_v7  ;;  %v73_v23 = vsel %vm71_vm1, %v68_v11, %v69_v12  ;;  %v74_v24 = vsel %vm71_vm1, %v67_v9, %v68_v11  ;;  %v154_v33 = vld [vmem:[#allocation5 + $0x30] sm:$0xff]  ;;  %v157_v36 = vld [vmem:[#allocation5 + $0x48] sm:$0xff]  ;;  %v156_v37 = vld [vmem:[#allocation5 + $0x40] sm:$0xff]  ;;  %s778_s12 = smov 96   ;;  %602 = vmatprep.subr.bf16.mxu0 %v601_v35  ;;  %s779_s13 = smov 64  }
  0x2d   :  { %v683_v22 = vpack.i.bf16 %v55_v15, %v56_v16  ;;  %v65_v25 = vsel %vm62_vm2, %v58_v13, %v59_v14  ;;  %v693_v29 = vpack.i.bf16 %v73_v23, %v74_v24  ;;  %v64_v30 = vsel %vm62_vm2, %v59_v14, %v60_v17  ;;  %v159_v38 = vld [vmem:[#allocation5 + $0x58] sm:$0xff]  ;;  %v161_v42 = vld [vmem:[#allocation5 + $0x68] sm:$0xff]  ;;  %v164_v43 = vld [vmem:[#allocation5 + $0x80] sm:$0xff]  ;;  %604 = vmatpush1.bf16.msra.mxu0 %v603_v40 }
  0x2e   :  { %v688_v34 = vpack.i.bf16 %v64_v30, %v65_v25  ;;  %v61_v39 = vrot.slane %v842_v10, 2  ;;  %v642_v41 = vpack.c.bf16 %v153_v28, %v150_v27  ;;  %v54_v44 = vsel %vm53_vm0, %v49_v8, %v50_v18  ;;  %v160_v49 = vld [vmem:[#allocation5 + $0x60] sm:$0xff]  ;;  %v163_v50 = vld [vmem:[#allocation5 + $0x78] sm:$0xff]  ;;  %v162_v53 = vld [vmem:[#allocation5 + $0x70] sm:$0xff] }
  0x2f   :  { %684 = vrot.lane.b32.xlu0 %v683_v22, %s777_s1  ;;  %694 = vrot.lane.b32.xlu1 %v693_v29, %s778_s12  ;;  %v70_v45 = vrot.slane %v842_v10, 3  ;;  %v605_v46 = vpack.c.bf16 %v158_v32, %v155_v31  ;;  %v607_v47 = vpack.c.bf16 %v157_v36, %v154_v33  ;;  %v645_v48 = vpack.c.bf16 %v159_v38, %v156_v37  ;;  %v165_v54 = vld [vmem:[#allocation5 + $0x88] sm:$0xff]  ;;  %v167_v57 = vld [vmem:[#allocation5 + $0x98] sm:$0xff]  ;;  %v170_v58 = vld [vmem:[#allocation5 + $0xb0] sm:$0xff] }
  0x30   :  { %643 = vmatpush1.bf16.msra.mxu1 %v642_v41  ;;  %v76_v51 = vrot.slane %v829_v3, 4  ;;  %v609_v52 = vpack.c.bf16 %v164_v43, %v161_v42  ;;  %v77_v55 = vrot.slane %v831_v4, 4  ;;  %vm80_vm3 = vcmp.lt.s32.totalorder %v827_v2, 4  ;;  %v166_v0 = vld [vmem:[#allocation5 + $0x90] sm:$0xff]  ;;  %v168_v14 = vld [vmem:[#allocation5 + $0xa0] sm:$0xff]  ;;  %v171_v15 = vld [vmem:[#allocation5 + $0xb8] sm:$0xff] }
  0x31   :  { %606 = vmatprep.subr.bf16.mxu0 %v605_v46  ;;  %v63_v56 = vsel %vm62_vm2, %v60_v17, %v61_v39  ;;  %644 = vmatprep.subr.bf16.mxu1 %v776_v1  ;;  %v78_v59 = vrot.slane %v833_v5, 4  ;;  %v72_v60 = vsel %vm71_vm1, %v69_v12, %v70_v45  ;;  %v611_v61 = vpack.c.bf16 %v163_v50, %v160_v49  ;;  %v169_v12 = vld [vmem:[#allocation5 + $0xa8] sm:$0xff]  ;;  %v176_v20 = vld [vmem:[#allocation5 + $0xe0] sm:$0xff]  ;;  %v174_v25 = vld [vmem:[#allocation5 + $0xd0] sm:$0xff] }
  0x32   :  { %v79_v62 = vrot.slane %v842_v10, 4  ;;  %608 = vmatpush1.bf16.msra.mxu0 %v607_v47  ;;  %v648_v63 = vpack.c.bf16 %v165_v54, %v162_v53  ;;  %v83_v7 = vsel %vm80_vm3, %v76_v51, %v77_v55  ;;  %v613_v11 = vpack.c.bf16 %v170_v58, %v167_v57  ;;  %v173_v19 = vld [vmem:[#allocation5 + $0xc8] sm:$0xff]  ;;  %v172_v24 = vld [vmem:[#allocation5 + $0xc0] sm:$0xff]  ;;  %v179_v27 = vld [vmem:[#allocation5 + $0xf8] sm:$0xff] }
  0x33   :  { %689 = vrot.lane.b32.xlu0 %v688_v34, %s779_s13  ;;  %93 = vrot.lane.b32.xlu1 %v54_v44, %s777_s1  ;;  %v894_v8 = vsel %vm80_vm3, %v77_v55, %v78_v59  ;;  %v57_v17 = vsel %vm53_vm0, %v50_v18, %v47_v6  ;;  %vm133_vm4 = vcmask 261120   ;;  %v66_v21 = vsel %vm62_vm2, %v61_v39, %v58_v13  ;;  %v175_v18 = vld [vmem:[#allocation5 + $0xd8] sm:$0xff]  ;;  %v177_v26 = vld [vmem:[#allocation5 + $0xe8] sm:$0xff]  ;;  %v182_v28 = vld [vmem:[#allocation5 + $0x110] sm:$0xff] }
  0x34   :  { %646 = vmatpush1.bf16.msra.mxu1 %v645_v48  ;;  %610 = vmatprep.subr.bf16.mxu0 %v609_v52  ;;  %v901_v16 = vsel %vm80_vm3, %v79_v62, %v76_v51  ;;  %v615_v22 = vpack.c.bf16 %v169_v12, %v166_v0  ;;  %v651_v23 = vpack.c.bf16 %v171_v15, %v168_v14  ;;  %v178_v31 = vld [vmem:[#allocation5 + $0xf0] sm:$0xff]  ;;  %v181_v33 = vld [vmem:[#allocation5 + $0x108] sm:$0xff]  ;;  %v180_v34 = vld [vmem:[#allocation5 + $0x100] sm:$0xff]  ;;  %vm138_vm5 = vcmask 523264  }
  0x35   :  { %647 = vmatprep.subr.bf16.mxu1 %v776_v1  ;;  %593 = vmatprep.mubr.msk.f32.mxu0 %vm133_vm4, %v83_v7  ;;  %v617_v6 = vpack.c.bf16 %v176_v20, %v173_v19  ;;  %v75_v13 = vsel %vm71_vm1, %v70_v45, %v67_v9  ;;  %v619_v29 = vpack.c.bf16 %v175_v18, %v172_v24  ;;  %v183_v35 = vld [vmem:[#allocation5 + $0x118] sm:$0xff]  ;;  %v185_v36 = vld [vmem:[#allocation5 + $0x128] sm:$0xff]  ;;  %v188_v9 = vld [vmem:[#allocation5 + $0x140] sm:$0xff]  ;;  %vm143_vm6 = vcmask 785408  }
  0x36   :  { %597 = vmatprep.mubr.msk.f32.mxu1 %vm133_vm4, %v83_v7  ;;  %612 = vmatpush1.bf16.msra.mxu0 %v611_v61  ;;  %v654_v30 = vpack.c.bf16 %v177_v26, %v174_v25  ;;  %v621_v32 = vpack.c.bf16 %v182_v28, %v179_v27  ;;  %v623_v37 = vpack.c.bf16 %v181_v33, %v178_v31  ;;  %v184_v39 = vld [vmem:[#allocation5 + $0x120] sm:$0xff]  ;;  %v187_v41 = vld [vmem:[#allocation5 + $0x138] sm:$0xff]  ;;  %v186_v42 = vld [vmem:[#allocation5 + $0x130] sm:$0xff]  ;;  %vm469_vm10 = vcmask 1041409  }
  0x37   :  { %109 = vrot.lane.b32.xlu0 %v63_v56, %s779_s13  ;;  %125 = vrot.lane.b32.xlu1 %v72_v60, %s778_s12  ;;  %v657_v38 = vpack.c.bf16 %v183_v35, %v180_v34  ;;  %v625_v40 = vpack.c.bf16 %v188_v9, %v185_v36  ;;  %v189_v43 = vld [vmem:[#allocation5 + $0x148] sm:$0xff]  ;;  %v191_v44 = vld [vmem:[#allocation5 + $0x158] sm:$0xff]  ;;  %v194_v45 = vld [vmem:[#allocation5 + $0x170] sm:$0xff]  ;;  %v627_v46 = vpack.c.bf16 %v187_v41, %v184_v39  ;;  %vm471_vm11 = vcmask 1043459  }
  0x38   :  { %649 = vmatpush1.bf16.msra.mxu1 %v648_v63  ;;  %614 = vmatprep.subr.bf16.mxu0 %v613_v11  ;;  %v660_v47 = vpack.c.bf16 %v189_v43, %v186_v42  ;;  %v190_v48 = vld [vmem:[#allocation5 + $0x150] sm:$0xff]  ;;  %v629_v49 = vpack.c.bf16 %v194_v45, %v191_v44  ;;  %v193_v50 = vld [vmem:[#allocation5 + $0x168] sm:$0xff]  ;;  %v192_v51 = vld [vmem:[#allocation5 + $0x160] sm:$0xff]  ;;  %v216_v42 = vsub.s32 1, %v827_v2  ;;  %vm473_vm12 = vcmask 1045509  }
  0x39   :  { %650 = vmatprep.subr.bf16.mxu1 %v776_v1  ;;  %v195_v52 = vld [vmem:[#allocation5 + $0x178] sm:$0xff]  ;;  %v197_v53 = vld [vmem:[#allocation5 + $0x188] sm:$0xff]  ;;  %v200_v54 = vld [vmem:[#allocation5 + $0x1a0] sm:$0xff]  ;;  %v631_v55 = vpack.c.bf16 %v193_v50, %v190_v48  ;;  %vm475_vm13 = vcmask 1047559  }
  0x3a   :  { %616 = vmatpush1.bf16.msra.mxu0 %v615_v22  ;;  %v663_v56 = vpack.c.bf16 %v195_v52, %v192_v51  ;;  %v196_v57 = vld [vmem:[#allocation5 + $0x180] sm:$0xff]  ;;  %v633_v58 = vpack.c.bf16 %v200_v54, %v197_v53  ;;  %v199_v60 = vld [vmem:[#allocation5 + $0x198] sm:$0xff]  ;;  %v198_v61 = vld [vmem:[#allocation5 + $0x190] sm:$0xff] }
  0x3b   :  { %95 = vrot.lane.b32.xlu0 %v57_v17, %s777_s1  ;;  %111 = vrot.lane.b32.xlu1 %v66_v21, %s779_s13  ;;  %v201_v63 = vld [vmem:[#allocation5 + $0x1a8] sm:$0xff]  ;;  %v203_v0 = vld [vmem:[#allocation5 + $0x1b8] sm:$0xff]  ;;  %v206_v7 = vld [vmem:[#allocation5 + $0x1d0] sm:$0xff]  ;;  %v635_v11 = vpack.c.bf16 %v199_v60, %v196_v57 }
  0x3c   :  { %652 = vmatpush1.bf16.msra.mxu1 %v651_v23  ;;  %618 = vmatprep.subr.bf16.mxu0 %v617_v6  ;;  %v666_v12 = vpack.c.bf16 %v201_v63, %v198_v61  ;;  %v202_v14 = vld [vmem:[#allocation5 + $0x1b0] sm:$0xff]  ;;  %v637_v15 = vpack.c.bf16 %v206_v7, %v203_v0  ;;  %v205_v17 = vld [vmem:[#allocation5 + $0x1c8] sm:$0xff]  ;;  %v204_v19 = vld [vmem:[#allocation5 + $0x1c0] sm:$0xff] }
  0x3d   :  { %653 = vmatprep.subr.bf16.mxu1 %v776_v1  ;;  %v207_v20 = vld [vmem:[#allocation5 + $0x1d8] sm:$0xff]  ;;  %v639_v21 = vpack.c.bf16 %v205_v17, %v202_v14  ;;  %v208_v41 = vld [vmem:[%s1003_s2] sm:$0x7]  ;;  %s781_s2 = smov [#allocation7]  }
  0x3e   :  { %620 = vmatpush1.bf16.msra.mxu0 %v619_v29  ;;  %v669_v22 = vpack.c.bf16 %v207_v20, %v204_v19  ;;  %s583_s16 = sshll.u32 %s781_s2, 4  ;;  %s584_s16 = int_to_ptr.vmem [resolvable:$true] %s583_s16 }
  0x3f   :  { %127 = vrot.lane.b32.xlu0 %v75_v13, %s778_s12  ;;  %622 = vmatprep.subr.bf16.mxu0 %v621_v32  ;;  %s742_s17 = scalar_lea.vmem %s584_s16, 96  ;;  %p747_p3 = scmp.lt.s32.totalorder %s584_s16, %s584_s16 }
  0x40   :  { %655 = vmatpush1.bf16.msra.mxu1 %v654_v30  ;;  %p743_p2 = scmp.ne.s32.totalorder %s584_s16, %s742_s17  ;;  %p748_p4 = scmp.lt.s32.totalorder %s742_s17, %s742_s17 }
  0x41   :  { %656 = vmatprep.subr.bf16.mxu1 %v776_v1 }
  0x42   :  { %624 = vmatpush1.bf16.msra.mxu0 %v623_v37  ;;  %p749_p5 = por %p748_p4, %p747_p3 }
  0x43   :  { %626 = vmatprep.subr.bf16.mxu0 %v625_v40  ;;  %v220_v40 = vsub.s32 2, %v827_v2 }
  0x44   :  { %658 = vmatpush1.bf16.msra.mxu1 %v657_v38  ;;  %p750_p6 = pnand %p749_p5, %p743_p2 }
  0x45   :  { %659 = vmatprep.subr.bf16.mxu1 %v776_v1  ;;  %v221_v45 = vrot.slane %v208_v41, %v220_v40 }
  0x46   :  { %628 = vmatpush1.bf16.msra.mxu0 %v627_v46 }
  0x47   :  { %630 = vmatprep.subr.bf16.mxu0 %v629_v49  ;;  %v423_v49 = vadd.s32 8, %v827_v2 }
  0x48   :  { %661 = vmatpush1.bf16.msra.mxu1 %v660_v47  ;;  %v217_v47 = vrot.slane %v208_v41, %v216_v42 }
  0x49   :  { %662 = vmatprep.subr.bf16.mxu1 %v776_v1  ;;  %vm425_vm7 = vcmp.lt.s32.totalorder %v423_v49, 14  ;;  %vm529_vm8 = vcmp.lt.s32.totalorder %v423_v49, 12  ;;  %vm480_vm9 = vcmp.lt.s32.totalorder %v423_v49, 13 }
  0x4a   :  { %632 = vmatpush1.bf16.msra.mxu0 %v631_v55 }
  0x4b   :  { %634 = vmatprep.subr.bf16.mxu0 %v633_v58 }
  0x4c   :  { %664 = vmatpush1.bf16.msra.mxu1 %v663_v56 }
  0x4d   :  { %665 = vmatprep.subr.bf16.mxu1 %v776_v1 }
  0x4e   :  { %636 = vmatpush1.bf16.msra.mxu0 %v635_v11 }
  0x4f   :  { %638 = vmatprep.subr.bf16.mxu0 %v637_v15 }
  0x50   :  { %667 = vmatpush1.bf16.msra.mxu1 %v666_v12 }
  0x51   :  { %668 = vmatprep.subr.bf16.mxu1 %v776_v1 }
  0x52   :  { %640 = vmatpush1.bf16.msra.mxu0 %v639_v21 }
  0x54   :  { %670 = vmatpush1.bf16.msra.mxu1 %v669_v22 }
  0xa1   :  { %v685_v23 = vpop.permute.xlu0 %684  ;;  %v695_v24 = vpop.permute.xlu1 %694 }
  0xa2   :  { %v686_v6 = vunpack.i.l.bf16 %v685_v23  ;;  %v687_v18 = vunpack.i.h.bf16 %v685_v23  ;;  %v696_v25 = vunpack.i.l.bf16 %v695_v24  ;;  %v697_v31 = vunpack.i.h.bf16 %v695_v24 }
  0xa4   :  { %v134_v29 = vsel %vm133_vm4, %v829_v3, %v686_v6  ;;  %v135_v33 = vsel %vm133_vm4, %v831_v4, %v687_v18  ;;  %v81_v3 = vsel %vm80_vm3, %v78_v59, %v79_v62  ;;  %v212_v62 = vsub.s32 0, %v827_v2 }
  0xa5   :  { %v690_v26 = vpop.permute.xlu0 %689  ;;  %v94_v28 = vpop.permute.xlu1 %93 }
  0xa6   :  { %v692_v13 = vunpack.i.h.bf16 %v690_v26  ;;  %v691_v27 = vunpack.i.l.bf16 %v690_v26  ;;  %v136_v36 = vsel %vm133_vm4, %v833_v5, %v94_v28  ;;  %v213_v43 = vrot.slane %v208_v41, %v212_v62 }
  0xa8   :  { %v139_v30 = vsel %vm138_vm5, %v134_v29, %v691_v27  ;;  %v140_v35 = vsel %vm138_vm5, %v135_v33, %v692_v13 }
  0xa9   :  { %v110_v1 = vpop.permute.xlu0 %109  ;;  %v144_v32 = vsel %vm143_vm6, %v139_v30, %v696_v25  ;;  %v126_v34 = vpop.permute.xlu1 %125  ;;  %v145_v9 = vsel %vm143_vm6, %v140_v35, %v697_v31 }
  0xaa   :  { %302 = vmatmul.mubr.f32.vlgmr.msra.gmra.mrb[0].mxu0 %v144_v32  ;;  %391 = vmatmul.mubr.f32.vlgmr.msra.gmra.mrb[0].mxu1 %v144_v32  ;;  %v141_v37 = vsel %vm138_vm5, %v136_v36, %v110_v1 }
  0xab   :  { %594 = vmatprep.mubr.msk.f32.mxu0 %vm133_vm4, %v894_v8  ;;  %598 = vmatprep.mubr.msk.f32.mxu1 %vm133_vm4, %v894_v8  ;;  %v146_v5 = vsel %vm143_vm6, %v141_v37, %v126_v34 }
  0xad   :  { %v96_v4 = vpop.permute.xlu0 %95  ;;  %v112_v39 = vpop.permute.xlu1 %111 }
  0xae   :  { %308 = vmatmul.mubr.f32.gmra.mrb[2].mxu0 %v145_v9  ;;  %396 = vmatmul.mubr.f32.gmra.mrb[2].mxu1 %v145_v9  ;;  %v137_v38 = vsel %vm133_vm4, %v842_v10, %v96_v4 }
  0xaf   :  { %595 = vmatprep.mubr.msk.f32.mxu0 %vm133_vm4, %v81_v3  ;;  %599 = vmatprep.mubr.msk.f32.mxu1 %vm133_vm4, %v81_v3  ;;  %v142_v8 = vsel %vm138_vm5, %v137_v38, %v112_v39 }
  0xb1   :  { %v128_v59 = vpop.permute.xlu0 %127 }
  0xb2   :  { %314 = vmatmul.mubr.f32.gmra.mrb[4].mxu0 %v146_v5  ;;  %401 = vmatmul.mubr.f32.gmra.mrb[4].mxu1 %v146_v5  ;;  %v147_v10 = vsel %vm143_vm6, %v142_v8, %v128_v59 }
  0xb3   :  { %596 = vmatprep.mubr.msk.f32.mxu0 %vm133_vm4, %v901_v16  ;;  %600 = vmatprep.mubr.msk.f32.mxu1 %vm133_vm4, %v901_v16 }
  0xb6   :  { %320 = vmatmul.mubr.f32.gmra.mrb[6].mxu0 %v147_v10  ;;  %406 = vmatmul.mubr.f32.gmra.mrb[6].mxu1 %v147_v10 }
 0x17d   :  { %v303_v44 = vpop.f32.mrb[0].mxu0  ;;  %v392_v46 = vpop.f32.mrb[0].mxu1 }
 0x17e   :  { %v305_v16 = vpop.f32.mrb[1].mxu0  ;;  %v394_v48 = vpop.f32.mrb[1].mxu1  ;;  %v304_v50 = vadd.f32 %v303_v44, %v213_v43  ;;  %v393_v51 = vadd.f32 %v392_v46, %v221_v45 }
 0x17f   :  { %v306_v54 = vadd.f32 %v305_v16, %v217_v47 }
 0x180   :  { %v411_v0 = vmax.f32 %v304_v50, 0.0  ;;  %v413_v7 = vmax.f32 %v393_v51, 0.0 }
 0x181   :  { %v309_v52 = vpop.f32.mrb[2].mxu0  ;;  %v397_v53 = vpop.f32.mrb[2].mxu1  ;;  %v412_v15 = vmax.f32 %v306_v54, 0.0 }
 0x182   :  { %v310_v55 = vadd.f32 %v309_v52, %v213_v43  ;;  %v398_v56 = vadd.f32 %v397_v53, %v221_v45  ;;  %v311_v57 = vpop.f32.mrb[3].mxu0  ;;  %v399_v58 = vpop.f32.mrb[3].mxu1 }
 0x183   :  { %v312_v60 = vadd.f32 %v311_v57, %v217_v47 }
 0x184   :  { %v414_v61 = vmax.f32 %v310_v55, 0.0  ;;  %v416_v63 = vmax.f32 %v398_v56, 0.0 }
 0x185   :  { %v415_v11 = vmax.f32 %v312_v60, 0.0  ;;  %v315_v12 = vpop.f32.mrb[4].mxu0  ;;  %v402_v14 = vpop.f32.mrb[4].mxu1 }
 0x186   :  { %v431_v17 = vsel %vm425_vm7, %v414_v61, 0.0  ;;  %v535_v19 = vsel %vm529_vm8, %v416_v63, 0.0  ;;  %v317_v20 = vpop.f32.mrb[5].mxu0  ;;  %v404_v21 = vpop.f32.mrb[5].mxu1  ;;  %v316_v26 = vadd.f32 %v315_v12, %v213_v43  ;;  %v403_v13 = vadd.f32 %v402_v14, %v221_v45 }
 0x187   :  { %v434_v22 = vmax.f32 %v411_v0, %v431_v17  ;;  %v538_v23 = vmax.f32 %v413_v7, %v535_v19  ;;  %v486_v24 = vsel %vm480_vm9, %v415_v11, 0.0  ;;  %v318_v36 = vadd.f32 %v317_v20, %v217_v47 }
 0x188   :  { %v489_v6 = vmax.f32 %v412_v15, %v486_v24  ;;  %v417_v9 = vmax.f32 %v316_v26, 0.0  ;;  %v419_v37 = vmax.f32 %v403_v13, 0.0 }
 0x189   :  { %v435_v18 = vrot.slane %v434_v22, 4  ;;  %v539_v25 = vrot.slane %v538_v23, 4  ;;  %v321_v27 = vpop.f32.mrb[6].mxu0  ;;  %v407_v28 = vpop.f32.mrb[6].mxu1  ;;  %v418_v41 = vmax.f32 %v318_v36, 0.0 }
 0x18a   :  { %v490_v29 = vrot.slane %v489_v6, 4  ;;  %v322_v30 = vadd.f32 %v321_v27, %v213_v43  ;;  %v408_v31 = vadd.f32 %v407_v28, %v221_v45  ;;  %v323_v1 = vpop.f32.mrb[7].mxu0  ;;  %v409_v32 = vpop.f32.mrb[7].mxu1  ;;  %v780_v45 = vmov 1983009808  }
 0x18b   :  { %v436_v33 = vmax.f32 %v434_v22, %v435_v18  ;;  %v540_v34 = vmax.f32 %v538_v23, %v539_v25  ;;  %v324_v35 = vadd.f32 %v323_v1, %v217_v47  ;;  %v451_v46 = vunpack.c.l.s4 %v780_v45 }
 0x18c   :  { %v420_v3 = vmax.f32 %v322_v30, 0.0  ;;  %v422_v4 = vmax.f32 %v408_v31, 0.0  ;;  %v491_v39 = vmax.f32 %v489_v6, %v490_v29 }
 0x18d   :  { %v421_v38 = vmax.f32 %v324_v35, 0.0  ;;  %v437_v59 = vrot.slane %v436_v33, 2  ;;  %v541_v10 = vrot.slane %v540_v34, 2  ;;  %v452_v56 = vunpack.c.0.s8 %v451_v46 }
 0x18e   :  { %v433_v5 = vsel %vm425_vm7, %v420_v3, 0.0  ;;  %v537_v8 = vsel %vm529_vm8, %v422_v4, 0.0  ;;  %v492_v47 = vrot.slane %v491_v39, 2 }
 0x18f   :  { %v441_v62 = vmax.f32 %v417_v9, %v433_v5  ;;  %v545_v40 = vmax.f32 %v419_v37, %v537_v8  ;;  %v488_v42 = vsel %vm480_vm9, %v421_v38, 0.0  ;;  %v438_v48 = vmax.f32 %v436_v33, %v437_v59 }
 0x190   :  { %v496_v16 = vmax.f32 %v418_v41, %v488_v42  ;;  %v542_v50 = vmax.f32 %v540_v34, %v541_v10  ;;  %v493_v57 = vmax.f32 %v491_v39, %v492_v47  ;;  %v455_v12 = vsub.s32 %v452_v56, %v827_v2 }
 0x191   :  { %v442_v43 = vrot.slane %v441_v62, 4  ;;  %v546_v44 = vrot.slane %v545_v40, 4  ;;  %v439_v60 = vrot.slane %v438_v48, 1 }
 0x192   :  { %v497_v53 = vrot.slane %v496_v16, 4  ;;  %v543_v61 = vrot.slane %v542_v50, 1  ;;  %v494_v14 = vrot.slane %v493_v57, 1 }
 0x193   :  { %v443_v51 = vmax.f32 %v441_v62, %v442_v43  ;;  %v547_v52 = vmax.f32 %v545_v40, %v546_v44  ;;  %v440_v17 = vmax.f32 %v438_v48, %v439_v60 }
 0x194   :  { %v498_v58 = vmax.f32 %v496_v16, %v497_v53  ;;  %v544_v19 = vmax.f32 %v542_v50, %v543_v61  ;;  %v495_v6 = vmax.f32 %v493_v57, %v494_v14 }
 0x195   :  { %v444_v54 = vrot.slane %v443_v51, 2  ;;  %v548_v55 = vrot.slane %v547_v52, 2  ;;  %v456_v25 = vrot.slane %v440_v17, %v455_v12 }
 0x196   :  { %v499_v0 = vrot.slane %v498_v58, 2  ;;  %v560_v26 = vrot.slane %v544_v19, %v455_v12  ;;  %v511_v30 = vrot.slane %v495_v6, %v455_v12 }
 0x197   :  { %v445_v49 = vmax.f32 %v443_v51, %v444_v54  ;;  %v549_v63 = vmax.f32 %v547_v52, %v548_v55 }
 0x198   :  { %v500_v15 = vmax.f32 %v498_v58, %v499_v0 }
 0x199   :  { %v446_v7 = vrot.slane %v445_v49, 1  ;;  %v550_v11 = vrot.slane %v549_v63, 1 }
 0x19a   :  { %v501_v22 = vrot.slane %v500_v15, 1 }
 0x19b   :  { %v447_v20 = vmax.f32 %v445_v49, %v446_v7  ;;  %v551_v21 = vmax.f32 %v549_v63, %v550_v11 }
 0x19c   :  { %v502_v18 = vmax.f32 %v500_v15, %v501_v22 }
 0x19d   :  { %v463_v23 = vrot.slane %v447_v20, %v455_v12  ;;  %v567_v24 = vrot.slane %v551_v21, %v455_v12 }
 0x19e   :  { %v518_v28 = vrot.slane %v502_v18, %v455_v12 }
 0x19f   :  { %v468_v13 = vrot.slane %v463_v23, 7  ;;  %v570_v27 = vrot.slane %v567_v24, 7 }
 0x1a0   :  { %v521_v31 = vrot.slane %v518_v28, 7 }
 0x1a1   :  { %v470_v2 = vsel %vm469_vm10, %v468_v13, %v456_v25  ;;  %v571_v29 = vsel %vm469_vm10, %v570_v27, %v560_v26 }
 0x1a2   :  { %v472_v1 = vsel %vm471_vm11, %v468_v13, %v470_v2  ;;  %v572_v32 = vsel %vm471_vm11, %v570_v27, %v571_v29  ;;  %v522_v36 = vsel %vm469_vm10, %v521_v31, %v511_v30 }
 0x1a3   :  { %v474_v33 = vsel %vm473_vm12, %v468_v13, %v472_v1  ;;  %v573_v34 = vsel %vm473_vm12, %v570_v27, %v572_v32  ;;  %v523_v4 = vsel %vm471_vm11, %v521_v31, %v522_v36 }
 0x1a4   :  { %v476_v35 = vsel %vm475_vm13, %v468_v13, %v474_v33  ;;  %v574_v3 = vsel %vm475_vm13, %v570_v27, %v573_v34  ;;  %v524_v9 = vsel %vm473_vm12, %v521_v31, %v523_v4 }
 0x1a5   :  { %478 = vst [vmem:[#allocation7] sm:$0x3] %v476_v35  ;;  %576 = vst [vmem:[#allocation7 + $0x4] sm:$0x3] %v574_v3  ;;  %v525_v37 = vsel %vm475_vm13, %v521_v31, %v524_v9 }
 0x1a6   :  { %527 = vst [vmem:[#allocation7 + $0x2] sm:$0x3] %v525_v37 }
 0x1a7   :  { %753 = shalt.err (!%p750_p6)
}
 0x1a8   :  { %s754_s20 = scalar_lea.hbm %s1004_s3, 96 }
 0x1a9   :  { %p755_p7 = scmp.ne.s32.totalorder %s1004_s3, %s754_s20  ;;  %p758_p8 = scmp.lt.u32.totalorder %s754_s20, %s1004_s3 }
 0x1ab   :  { %p760_p9 = pnand %p758_p8, %p755_p7 }
 0x1ad   :  { %763 = shalt.err (!%p760_p9)
}
 0x1ae   :  { %586 = dma.vmem_to_hbm [thread:$0]  %s584_s16, 96, %s1004_s3, [#allocation4]  }
 0x1af   :  { %768 = dma.done.wait [#allocation4], 96  }
 0x1b0   :  { %769 = vsyncadd [#allocation4], 4294967200 }
 0x1b1   :  { %590 = vsyncpa [#allocation3], 1 }
 0x1b2   :  { %591 = vsyncpa [#allocation6], 1 }
 0x1b3   :  { %592 = vsyncpa [#allocation4], 1 }

</bundles_post_ra>
